<compile_context>
chip_gen: v6e
topology: v6e:2x2x1
jax: 0.10.0
libtpu: 0.0.40
codegen_flags: <defaults>
</compile_context>

<pallas_src>
import numpy as np
import jax
import jax.numpy as jnp
from jax.experimental import pallas as pl
from jax.experimental.pallas import tpu as pltpu


# ----------------------------------------------------------------------------
# Host-side constant construction
# ----------------------------------------------------------------------------
def _gaussian_taps_1d(sigma, size):
    """1D taps such that outer(taps, taps) == gaussian_2d / sum(gaussian_2d)."""
    ax = np.arange(size, dtype=np.float64) - (size - 1) / 2.0
    g = np.exp(-(ax ** 2) / (2.0 * sigma ** 2))
    return (g / g.sum()).astype(np.float64)


def _reflect_conv_matrix(taps, n):
    """M[i, j] = weight of input position j in output position i for a 1D
    cross-correlation with PyTorch 'reflect' padding (edge not repeated)."""
    K = len(taps)
    p = K // 2
    M = np.zeros((n, n), dtype=np.float64)
    for i in range(n):
        for d in range(K):
            j = i + d - p
            if j < 0:
                j = -j
            elif j >= n:
                j = 2 * n - 2 - j
            M[i, j] += taps[d]
    return M


def _vmem_capacity_bytes():
    try:
        return int(pltpu.get_tpu_info().vmem_capacity_bytes)
    except Exception:
        return 128 * 2 ** 20  # conservative fallback (v5e/v6e capacity)


# ----------------------------------------------------------------------------
# Kernels (fully vectorized over the batch tile; no per-image Python unroll)
# ----------------------------------------------------------------------------
def _make_kron_kernel(c50):
    c50 = np.float32(c50)

    def kernel(x_ref, y_ref, mt_ref, o_ref):
        # y block: (bt, C, H*W), lane-dense.
        yb = y_ref[...].astype(jnp.float32)
        s = jnp.sum(yb * yb, axis=1)                      # (bt, HW); 1/C folded into mt
        # One MXU matmul for the whole tile: blur_flat = s @ kron(A_H^T, A_W^T)/C
        blur = jnp.dot(s, mt_ref[...], preferred_element_type=jnp.float32)  # (bt, HW)
        d = jnp.sqrt(jnp.abs(blur)) + c50
        r = pl.reciprocal(d, approx=True)                 # EUP slot (near-free)
        r = r * (2.0 - d * r)                             # one Newton step -> full f32 accuracy
        xb = x_ref[...].astype(jnp.float32)
        o_ref[...] = (xb * r[:, None, :]).astype(o_ref.dtype)

    return kernel


def _make_separable_kernel(bt, H, W, c50):
    c50 = np.float32(c50)

    def kernel(x_ref, y_ref, awt_ref, aht_ref, o_ref):
        yb = y_ref[...].astype(jnp.float32)               # (bt, C, H*W)
        s = jnp.sum(yb * yb, axis=1).reshape(bt * H, W)   # (bt*H, W); 1/C folded into aht
        # Column blur: one leading-dim-collapsed matmul (M = bt*H fills the MXU).
        t = jnp.dot(s, awt_ref[...], preferred_element_type=jnp.float32)     # (bt*H, W)
        u = jnp.swapaxes(t.reshape(bt, H, W), 1, 2).reshape(bt * W, H)
        # Row blur: one leading-dim-collapsed matmul (M = bt*W).
        v = jnp.dot(u, aht_ref[...], preferred_element_type=jnp.float32)     # (bt*W, H)
        blur = jnp.swapaxes(v.reshape(bt, W, H), 1, 2).reshape(bt, H * W)
        d = jnp.sqrt(jnp.abs(blur)) + c50
        r = pl.reciprocal(d, approx=True)
        r = r * (2.0 - d * r)
        xb = x_ref[...].astype(jnp.float32)
        o_ref[...] = (xb * r[:, None, :]).astype(o_ref.dtype)

    return kernel


# ----------------------------------------------------------------------------
# Wrapper
# ----------------------------------------------------------------------------
def _pick_batch_tile(B, C, HW, itemsize, budget_bytes, reserved=0):
    # Double-buffered x/y/out blocks + ~3 live f32 slabs of in-kernel temporaries.
    per_img = C * HW * (3 * 2 * itemsize + 3 * 4)
    avail = max(budget_bytes - reserved, per_img)
    bt = max(1, min(B, avail // per_img))
    # Only force >=num_cores grid steps when the device actually has multiple
    # TensorCores (megacore / v7x); on single-TC parts use the biggest tile.
    cores = getattr(jax.devices()[0], "num_cores", 1) or 1
    if cores >= 2 and B >= cores:
        bt = min(bt, max(1, B // cores))
    while B % bt:
        bt -= 1
    return int(bt)


def contrast_normalization(x, y, kernel_size, radius, c50):
    """out = x / (sqrt(|gaussian_blur(mean_c(y^2))|) + c50), reflect padding, NCHW."""
    assert x.ndim == 4 and x.shape == y.shape, "x and y must be NCHW with equal shapes"
    assert x.dtype == y.dtype, "x and y must share a dtype"
    B, C, H, W = x.shape
    p = kernel_size // 2
    assert H > p and W > p, "reflect padding requires H, W > kernel_size // 2"
    HW = H * W

    taps = _gaussian_taps_1d(radius / np.sqrt(2.0), kernel_size)
    a_h = _reflect_conv_matrix(taps, H)
    a_w = _reflect_conv_matrix(taps, W)

    itemsize = np.dtype(x.dtype).itemsize
    cap = _vmem_capacity_bytes()

    use_kron = HW <= 1024  # full (HW,HW) blur operator only while it stays tiny (<=4 MiB)
    if use_kron:
        # blur_flat = s_flat @ kron(A_H^T, A_W^T) / C  (row-major vec identity)
        mt = (np.kron(a_h.T, a_w.T) / C).astype(np.float32)
        mats = [jnp.asarray(mt)]
        mat_specs = [pl.BlockSpec((HW, HW), lambda b: (0, 0))]
        mat_bytes = HW * HW * 4
        kernel_fn = _make_kron_kernel(c50)
    else:
        mats = [jnp.asarray(a_w.T.copy().astype(np.float32)),
                jnp.asarray((a_h.T / C).astype(np.float32))]
        mat_specs = [pl.BlockSpec((W, W), lambda b: (0, 0)),
                     pl.BlockSpec((H, H), lambda b: (0, 0))]
        mat_bytes = (H * H + W * W) * 4
        kernel_fn = None  # built after bt is known

    bt = _pick_batch_tile(B, C, HW, itemsize,
                          budget_bytes=cap // 2, reserved=2 * mat_bytes)
    grid = (B // bt,)
    if not use_kron:
        kernel_fn = _make_separable_kernel(bt, H, W, c50)

    # Scoped-VMEM limit sized from the actual block footprint, capped per-chip
    # (never above 3/4 of physical VMEM; v7x has only 64 MiB per TensorCore).
    blk = bt * C * HW
    est = 3 * 2 * blk * itemsize + 2 * mat_bytes + 3 * blk * 4
    vmem_limit = int(min(cap * 3 // 4, max(2 * est, 32 * 2 ** 20)))

    # Lane-dense layout for the dominant elementwise path: last dim = H*W.
    x3 = x.reshape(B, C, HW)
    y3 = y.reshape(B, C, HW)

    out = pl.pallas_call(
        kernel_fn,
        out_shape=jax.ShapeDtypeStruct((B, C, HW), x.dtype),
        grid=grid,
        in_specs=[
            pl.BlockSpec((bt, C, HW), lambda b: (b, 0, 0)),   # x
            pl.BlockSpec((bt, C, HW), lambda b: (b, 0, 0)),   # y
            *mat_specs,                                        # constant blur matrices
        ],
        out_specs=pl.BlockSpec((bt, C, HW), lambda b: (b, 0, 0)),
        compiler_params=pltpu.CompilerParams(
            dimension_semantics=("parallel",),
            vmem_limit_bytes=vmem_limit,
        ),
    )(x3, y3, *mats)

    return out.reshape(B, C, H, W)


# ----------------------------------------------------------------------------
# Pure-numpy reference (literal mirror of the PyTorch forward)
# ----------------------------------------------------------------------------
def _reference(x, y, kernel_size, radius, c50):
    x = np.asarray(x, dtype=np.float64)
    y = np.asarray(y, dtype=np.float64)
    B, C, H, W = x.shape
    sigma = radius / np.sqrt(2.0)
    ax = np.arange(kernel_size, dtype=np.float64) - (kernel_size - 1) / 2.0
    xx, yy = np.meshgrid(ax, ax)
    filt = np.exp(-(xx ** 2 + yy ** 2) / (2.0 * sigma ** 2))
    w = filt / (filt.sum() * C)                                    # per-channel Conv2d weight
    p = kernel_size // 2
    y2p = np.pad(y ** 2, ((0, 0), (0, 0), (p, p), (p, p)), mode="reflect")
    conv = np.zeros((B, H, W), dtype=np.float64)
    for c in range(C):
        for ky in range(kernel_size):
            for kx in range(kernel_size):
                conv += w[ky, kx] * y2p[:, c, ky:ky + H, kx:kx + W]
    return (x / (np.sqrt(np.abs(conv))[:, None] + c50)).astype(np.float32)


if __name__ == "__main__":
    key = jax.random.PRNGKey(0)
    kx_key, ky_key = jax.random.split(key)
    B, C, H, W = 2, 4, 16, 16
    kernel_size, radius, c50 = 5, 2.0, 0.3

    x = jax.random.uniform(kx_key, (B, C, H, W), dtype=jnp.float32)
    y = jax.random.uniform(ky_key, (B, C, H, W), dtype=jnp.float32)

    out = contrast_normalization(x, y, kernel_size, radius, c50)
    out = jax.block_until_ready(out)

    ref = _reference(np.asarray(x), np.asarray(y), kernel_size, radius, c50)
    np.testing.assert_allclose(np.asarray(out), ref, rtol=1e-4, atol=1e-4)

    print("KERNEL_OK")
</pallas_src>

<mosaic_0001>
module attributes {stable_mosaic.version = 11 : i64} {
  func.func @kernel(%arg0: i32, %arg1: memref<2x4x256xf32, #tpu.memory_space<vmem>>, %arg2: memref<2x4x256xf32, #tpu.memory_space<vmem>>, %arg3: memref<256x256xf32, #tpu.memory_space<vmem>>, %arg4: memref<2x4x256xf32, #tpu.memory_space<vmem>>) attributes {dimension_semantics = [#tpu.dimension_semantics<parallel>], iteration_bounds = array<i64: 1>, scalar_prefetch = 0 : i64, scratch_operands = 0 : i64, tpu.core_type = #tpu.core_type<tc>, window_params = [{transform_indices = @transform_0, window_bounds = array<i64: 2, 4, 256>}, {transform_indices = @transform_1, window_bounds = array<i64: 2, 4, 256>}, {pipeline_mode = #tpu.pipeline_mode<synchronous>, transform_indices = @transform_2, window_bounds = array<i64: 256, 256>}, {transform_indices = @transform_3, window_bounds = array<i64: 2, 4, 256>}]} {
    %c0 = arith.constant 0 : index
    %c0_0 = arith.constant 0 : index
    %c0_1 = arith.constant 0 : index
    %0 = vector.load %arg2[%c0, %c0_0, %c0_1] : memref<2x4x256xf32, #tpu.memory_space<vmem>>, vector<2x4x256xf32>
    %1 = arith.mulf %0, %0 : vector<2x4x256xf32>
    %cst = arith.constant dense<0.000000e+00> : vector<2x256xf32>
    %2 = vector.multi_reduction <add>, %1, %cst [1] : vector<2x4x256xf32> to vector<2x256xf32>
    %c0_2 = arith.constant 0 : index
    %c0_3 = arith.constant 0 : index
    %3 = vector.load %arg3[%c0_2, %c0_3] : memref<256x256xf32, #tpu.memory_space<vmem>>, vector<256x256xf32>
    %cst_4 = arith.constant dense<0.000000e+00> : vector<2x256xf32>
    %4 = tpu.matmul %2, %3, %cst_4 {dimension_numbers = #tpu.dot_dimension_numbers<[1], [0], [0], [1], [0, 0, 1, 1], [], []>} : vector<2x256xf32>, vector<256x256xf32>, vector<2x256xf32> -> vector<2x256xf32>
    %5 = math.absf %4 : vector<2x256xf32>
    %6 = math.sqrt %5 : vector<2x256xf32>
    %cst_5 = arith.constant 3.000000e-01 : f32
    %7 = vector.broadcast %cst_5 : f32 to vector<2x256xf32>
    %8 = arith.addf %6, %7 : vector<2x256xf32>
    %9 = tpu.reciprocal %8 {approx = true} : vector<2x256xf32> -> vector<2x256xf32>
    %10 = arith.mulf %8, %9 : vector<2x256xf32>
    %cst_6 = arith.constant 2.000000e+00 : f32
    %11 = vector.broadcast %cst_6 : f32 to vector<2x256xf32>
    %12 = arith.subf %11, %10 : vector<2x256xf32>
    %13 = arith.mulf %9, %12 : vector<2x256xf32>
    %c0_7 = arith.constant 0 : index
    %c0_8 = arith.constant 0 : index
    %c0_9 = arith.constant 0 : index
    %14 = vector.load %arg1[%c0_7, %c0_8, %c0_9] : memref<2x4x256xf32, #tpu.memory_space<vmem>>, vector<2x4x256xf32>
    %15 = vector.shape_cast %13 : vector<2x256xf32> to vector<2x1x256xf32>
    %16 = vector.broadcast %15 : vector<2x1x256xf32> to vector<2x4x256xf32>
    %17 = arith.mulf %14, %16 : vector<2x4x256xf32>
    %c0_10 = arith.constant 0 : index
    %c0_11 = arith.constant 0 : index
    %c0_12 = arith.constant 0 : index
    %18 = vector.load %arg4[%c0_10, %c0_11, %c0_12] : memref<2x4x256xf32, #tpu.memory_space<vmem>>, vector<2x4x256xf32>
    tpu.vector_store %arg4[%c0_10, %c0_11, %c0_12], %17 {strides = array<i32>} : memref<2x4x256xf32, #tpu.memory_space<vmem>>, vector<2x4x256xf32>,
    return
  }
  func.func @transform_0(%arg0: i32) -> (i32, i32, i32) {
    %c0_i32 = arith.constant 0 : i32
    %c0_i32_0 = arith.constant 0 : i32
    %c0_i32_1 = arith.constant 0 : i32
    return %arg0, %c0_i32, %c0_i32_0 : i32, i32, i32
  }
  func.func @transform_1(%arg0: i32) -> (i32, i32, i32) {
    %c0_i32 = arith.constant 0 : i32
    %c0_i32_0 = arith.constant 0 : i32
    %c0_i32_1 = arith.constant 0 : i32
    return %arg0, %c0_i32, %c0_i32_0 : i32, i32, i32
  }
  func.func @transform_2(%arg0: i32) -> (i32, i32) {
    %c0_i32 = arith.constant 0 : i32
    %c0_i32_0 = arith.constant 0 : i32
    %c0_i32_1 = arith.constant 0 : i32
    return %c0_i32, %c0_i32_0 : i32, i32
  }
  func.func @transform_3(%arg0: i32) -> (i32, i32, i32) {
    %c0_i32 = arith.constant 0 : i32
    %c0_i32_0 = arith.constant 0 : i32
    %c0_i32_1 = arith.constant 0 : i32
    return %arg0, %c0_i32, %c0_i32_0 : i32, i32, i32
  }
}

</mosaic_0001>

<bundles_post_ra>
// kernel: tpu_custom_call.1
= control target key start
LH: loop header
LB: loop body
LE: loop exit
PB: predicated region body
PF: predicated region fallthrough
CT: control target
= control target key end

     0   :  { %8 = vsyncpa [#allocation3], 0  ;;  %s493_s0 = inlined_call_operand.hbm [shape: f32[2,4,256], index: 0, kind: input, shape index: {}]   ;;  %s494_s1 = inlined_call_operand.hbm [shape: f32[2,4,256], index: 1, kind: input, shape index: {}]   ;;  %s495_s2 = inlined_call_operand.hbm [shape: f32[256,256], index: 2, kind: input, shape index: {}]   ;;  %s496_s3 = inlined_call_operand.hbm [shape: f32[2,4,256], index: 3, kind: output, shape index: {}]  }
   0x1   :  { %9 = vsyncpa [#allocation6], 0 }
   0x2   :  { %10 = vsyncpa [#allocation4], 0  ;;  %s437_s12 = smov [#allocation5]   ;;  %s438_s14 = smov [#allocation2]  }
   0x3   :  { %s28_s13 = sshll.u32 %s437_s12, 4  ;;  %s16_s15 = sshll.u32 %s438_s14, 4  ;;  %s29_s13 = int_to_ptr.vmem [resolvable:$true] %s28_s13  ;;  %s17_s15 = int_to_ptr.vmem [resolvable:$true] %s16_s15 }
   0x4   :  { %s359_s16 = scalar_lea.vmem %s29_s13, 256  ;;  %p364_p1 = scmp.lt.s32.totalorder %s29_s13, %s29_s13 }
   0x5   :  { %p360_p0 = scmp.ne.s32.totalorder %s29_s13, %s359_s16  ;;  %p365_p2 = scmp.lt.s32.totalorder %s359_s16, %s359_s16 }
   0x7   :  { %p366_p3 = por %p365_p2, %p364_p1 }
   0x9   :  { %p367_p4 = pnand %p366_p3, %p360_p0 }
   0xb   :  { %370 = shalt.err (!%p367_p4)
}
   0xc   :  { %s439_s17 = smov 128   ;;  %s440_s18 = smov 8  }
   0xd   :  { %34 = dma.hbm_to_vmem [thread:$0]  %s494_s1, 256, %s29_s13, [#allocation6], %s439_s17, %s439_s17, %s440_s18  }
   0xe   :  { %s379_s21 = scalar_lea.vmem %s17_s15, 256  ;;  %p384_p6 = scmp.lt.s32.totalorder %s17_s15, %s17_s15 }
   0xf   :  { %p380_p5 = scmp.ne.s32.totalorder %s17_s15, %s379_s21  ;;  %p385_p7 = scmp.lt.s32.totalorder %s379_s21, %s379_s21 }
  0x11   :  { %p386_p8 = por %p385_p7, %p384_p6 }
  0x13   :  { %p387_p9 = pnand %p386_p8, %p380_p5 }
  0x15   :  { %390 = shalt.err (!%p387_p9)
}
  0x16   :  { %22 = dma.hbm_to_vmem [thread:$0]  %s493_s0, 256, %s17_s15, [#allocation3], %s439_s17, %s439_s17, %s440_s18  }
  0x17   :  { %s441_s24 = smov [#allocation7]  }
  0x18   :  { %s40_s25 = sshll.u32 %s441_s24, 4  ;;  %s41_s25 = int_to_ptr.vmem [resolvable:$true] %s40_s25 }
  0x19   :  { %s399_s26 = scalar_lea.vmem %s41_s25, 8192  ;;  %p404_p11 = scmp.lt.s32.totalorder %s41_s25, %s41_s25 }
  0x1a   :  { %p400_p10 = scmp.ne.s32.totalorder %s41_s25, %s399_s26  ;;  %p405_p12 = scmp.lt.s32.totalorder %s399_s26, %s399_s26 }
  0x1c   :  { %p406_p13 = por %p405_p12, %p404_p11 }
  0x1e   :  { %p407_p0 = pnand %p406_p13, %p400_p10 }
  0x20   :  { %410 = shalt.err (!%p407_p0)
}
  0x21   :  { %s442_s1 = smov 256   ;;  %s443_s27 = smov 16  }
  0x22   :  { %46 = dma.hbm_to_vmem [thread:$0]  %s495_s2, 8192, %s41_s25, [#allocation6], %s442_s1, %s442_s1, %s443_s27  }
  0x23   :  { %431 = dma.done.wait [#allocation3], 256  }
  0x24   :  { %432 = vsyncadd [#allocation3], 4294967040 }
  0x25   :  { %433 = dma.done.wait [#allocation6], 8448  }
  0x26   :  { %434 = vsyncadd [#allocation6], 4294958848  ;;  %v126_v0 = vld [vmem:[#allocation7 + $0xf8] sm:$0xff]  ;;  %v125_v1 = vld [vmem:[#allocation7 + $0xf0] sm:$0xff]  ;;  %vm66_vm0 = vcmask 1043456   ;;  %vm163_vm1 = vcmask 1041409  }
  0x27   :  { %v124_v2 = vld [vmem:[#allocation7 + $0xe8] sm:$0xff]  ;;  %168 = vmatprep.subr.mxu0 %v126_v0  ;;  %v123_v3 = vld [vmem:[#allocation7 + $0xe0] sm:$0xff]  ;;  %v122_v4 = vld [vmem:[#allocation7 + $0xd8] sm:$0xff]  ;;  %s445_s0 = smov [#allocation8]  }
  0x28   :  { %169 = vmatpush1.msra.mxu0 %v125_v1  ;;  %v121_v5 = vld [vmem:[#allocation7 + $0xd0] sm:$0xff]  ;;  %v120_v6 = vld [vmem:[#allocation7 + $0xc8] sm:$0xff]  ;;  %v119_v7 = vld [vmem:[#allocation7 + $0xc0] sm:$0xff]  ;;  %s321_s2 = sshll.u32 %s445_s0, 4  ;;  %s322_s2 = int_to_ptr.vmem [resolvable:$true] %s321_s2 }
  0x29   :  { %170 = vmatprep.subr.mxu0 %v124_v2  ;;  %v118_v8 = vld [vmem:[#allocation7 + $0xb8] sm:$0xff]  ;;  %v117_v9 = vld [vmem:[#allocation7 + $0xb0] sm:$0xff]  ;;  %v116_v10 = vld [vmem:[#allocation7 + $0xa8] sm:$0xff]  ;;  %s411_s30 = scalar_lea.vmem %s322_s2, 256  ;;  %p416_p2 = scmp.lt.s32.totalorder %s322_s2, %s322_s2 }
  0x2a   :  { %171 = vmatpush1.msra.mxu0 %v123_v3  ;;  %v115_v11 = vld [vmem:[#allocation7 + $0xa0] sm:$0xff]  ;;  %v114_v12 = vld [vmem:[#allocation7 + $0x98] sm:$0xff]  ;;  %v113_v13 = vld [vmem:[#allocation7 + $0x90] sm:$0xff]  ;;  %p412_p1 = scmp.ne.s32.totalorder %s322_s2, %s411_s30  ;;  %p417_p3 = scmp.lt.s32.totalorder %s411_s30, %s411_s30 }
  0x2b   :  { %172 = vmatprep.subr.mxu0 %v122_v4  ;;  %v112_v14 = vld [vmem:[#allocation7 + $0x88] sm:$0xff]  ;;  %v111_v15 = vld [vmem:[#allocation7 + $0x80] sm:$0xff]  ;;  %v110_v16 = vld [vmem:[#allocation7 + $0x78] sm:$0xff] }
  0x2c   :  { %173 = vmatpush1.msra.mxu0 %v121_v5  ;;  %v109_v17 = vld [vmem:[#allocation7 + $0x70] sm:$0xff]  ;;  %v108_v18 = vld [vmem:[#allocation7 + $0x68] sm:$0xff]  ;;  %v107_v19 = vld [vmem:[#allocation7 + $0x60] sm:$0xff]  ;;  %p418_p4 = por %p417_p3, %p416_p2 }
  0x2d   :  { %174 = vmatprep.subr.mxu0 %v120_v6  ;;  %v106_v20 = vld [vmem:[#allocation7 + $0x58] sm:$0xff]  ;;  %v105_v21 = vld [vmem:[#allocation7 + $0x50] sm:$0xff]  ;;  %v104_v22 = vld [vmem:[#allocation7 + $0x48] sm:$0xff] }
  0x2e   :  { %175 = vmatpush1.msra.mxu0 %v119_v7  ;;  %v103_v23 = vld [vmem:[#allocation7 + $0x40] sm:$0xff]  ;;  %v56_v24 = vld [vmem:[#allocation5] sm:$0xff]  ;;  %v57_v25 = vld [vmem:[#allocation5 + $0x8] sm:$0xff]  ;;  %p419_p5 = pnand %p418_p4, %p412_p1 }
  0x2f   :  { %176 = vmatprep.subr.mxu0 %v118_v8  ;;  %v102_v26 = vld [vmem:[#allocation7 + $0x38] sm:$0xff]  ;;  %v58_v27 = vmul.f32 %v56_v24, %v56_v24  ;;  %v59_v28 = vmul.f32 %v57_v25, %v57_v25  ;;  %v101_v29 = vld [vmem:[#allocation7 + $0x30] sm:$0xff]  ;;  %v100_v30 = vld [vmem:[#allocation7 + $0x28] sm:$0xff] }
  0x30   :  { %177 = vmatpush1.msra.mxu0 %v117_v9  ;;  %v99_v33 = vld [vmem:[#allocation7 + $0x20] sm:$0xff]  ;;  %v98_v34 = vld [vmem:[#allocation7 + $0x18] sm:$0xff]  ;;  %v97_v37 = vld [vmem:[#allocation7 + $0x10] sm:$0xff] }
  0x31   :  { %178 = vmatprep.subr.mxu0 %v116_v10  ;;  %v62_v31 = vcombine.high %v58_v27, %v58_v27  ;;  %v63_v32 = vcombine.high %v59_v28, %v59_v28  ;;  %v96_v40 = vld [vmem:[#allocation7 + $0x8] sm:$0xff]  ;;  %v95_v41 = vld [vmem:[#allocation7] sm:$0xff]  ;;  %v158_v44 = vld [vmem:[#allocation7 + $0x1f8] sm:$0xff]  ;;  %v67_v56 = vsel %vm66_vm0, %v58_v27, 0.0  ;;  %v81_v57 = vsel %vm66_vm0, %v59_v28, 0.0 }
  0x32   :  { %179 = vmatpush1.msra.mxu0 %v115_v11  ;;  %v157_v45 = vld [vmem:[#allocation7 + $0x1f0] sm:$0xff]  ;;  %v156_v48 = vld [vmem:[#allocation7 + $0x1e8] sm:$0xff]  ;;  %v155_v49 = vld [vmem:[#allocation7 + $0x1e0] sm:$0xff]  ;;  %v68_v63 = vrot.slane %v67_v56, 4  ;;  %v82_v0 = vrot.slane %v81_v57, 4 }
  0x33   :  { %180 = vmatprep.subr.mxu0 %v114_v12  ;;  %v74_v35 = vsel %vm66_vm0, %v62_v31, 0.0  ;;  %v88_v36 = vsel %vm66_vm0, %v63_v32, 0.0  ;;  %v154_v52 = vld [vmem:[#allocation7 + $0x1d8] sm:$0xff]  ;;  %v153_v53 = vld [vmem:[#allocation7 + $0x1d0] sm:$0xff]  ;;  %v152_v58 = vld [vmem:[#allocation7 + $0x1c8] sm:$0xff] }
  0x34   :  { %181 = vmatpush1.msra.mxu0 %v113_v13  ;;  %v75_v38 = vrot.slane %v74_v35, 4  ;;  %v89_v39 = vrot.slane %v88_v36, 4  ;;  %v151_v59 = vld [vmem:[#allocation7 + $0x1c0] sm:$0xff]  ;;  %v150_v62 = vld [vmem:[#allocation7 + $0x1b8] sm:$0xff]  ;;  %v149_v1 = vld [vmem:[#allocation7 + $0x1b0] sm:$0xff]  ;;  %v69_v6 = vadd.f32 %v68_v63, %v67_v56  ;;  %v83_v7 = vadd.f32 %v82_v0, %v81_v57 }
  0x35   :  { %182 = vmatprep.subr.mxu0 %v112_v14  ;;  %v148_v3 = vld [vmem:[#allocation7 + $0x1a8] sm:$0xff]  ;;  %v147_v4 = vld [vmem:[#allocation7 + $0x1a0] sm:$0xff]  ;;  %v146_v5 = vld [vmem:[#allocation7 + $0x198] sm:$0xff] }
  0x36   :  { %183 = vmatpush1.msra.mxu0 %v111_v15  ;;  %v76_v42 = vadd.f32 %v75_v38, %v74_v35  ;;  %v90_v43 = vadd.f32 %v89_v39, %v88_v36  ;;  %v145_v8 = vld [vmem:[#allocation7 + $0x190] sm:$0xff]  ;;  %v144_v9 = vld [vmem:[#allocation7 + $0x188] sm:$0xff]  ;;  %v143_v10 = vld [vmem:[#allocation7 + $0x180] sm:$0xff]  ;;  %v70_v12 = vrot.slane %v69_v6, 2  ;;  %v84_v13 = vrot.slane %v83_v7, 2 }
  0x37   :  { %184 = vmatprep.subr.mxu0 %v110_v16  ;;  %v142_v11 = vld [vmem:[#allocation7 + $0x178] sm:$0xff]  ;;  %v141_v14 = vld [vmem:[#allocation7 + $0x170] sm:$0xff]  ;;  %v140_v15 = vld [vmem:[#allocation7 + $0x168] sm:$0xff] }
  0x38   :  { %185 = vmatpush1.msra.mxu0 %v109_v17  ;;  %v77_v46 = vrot.slane %v76_v42, 2  ;;  %v91_v47 = vrot.slane %v90_v43, 2  ;;  %v139_v16 = vld [vmem:[#allocation7 + $0x160] sm:$0xff]  ;;  %v138_v17 = vld [vmem:[#allocation7 + $0x158] sm:$0xff]  ;;  %v132_v27 = vld [vmem:[#allocation7 + $0x128] sm:$0xff] }
  0x39   :  { %186 = vmatprep.subr.mxu0 %v108_v18  ;;  %v71_v18 = vadd.f32 %v70_v12, %v69_v6  ;;  %v131_v28 = vld [vmem:[#allocation7 + $0x120] sm:$0xff]  ;;  %v129_v32 = vld [vmem:[#allocation7 + $0x110] sm:$0xff] }
  0x3a   :  { %187 = vmatpush1.msra.mxu0 %v107_v19  ;;  %v78_v50 = vadd.f32 %v77_v46, %v76_v42  ;;  %v92_v51 = vadd.f32 %v91_v47, %v90_v43  ;;  %v85_v19 = vadd.f32 %v84_v13, %v83_v7 }
  0x3b   :  { %188 = vmatprep.subr.mxu0 %v106_v20  ;;  %v137_v20 = vld [vmem:[#allocation7 + $0x150] sm:$0xff]  ;;  %v72_v24 = vrot.slane %v71_v18, 1 }
  0x3c   :  { %189 = vmatpush1.msra.mxu0 %v105_v21  ;;  %v79_v54 = vrot.slane %v78_v50, 1  ;;  %v93_v55 = vrot.slane %v92_v51, 1  ;;  %v136_v21 = vld [vmem:[#allocation7 + $0x148] sm:$0xff]  ;;  %v86_v25 = vrot.slane %v85_v19, 1 }
  0x3d   :  { %190 = vmatprep.subr.mxu0 %v104_v22  ;;  %v135_v22 = vld [vmem:[#allocation7 + $0x140] sm:$0xff] }
  0x3e   :  { %191 = vmatpush1.msra.mxu0 %v103_v23  ;;  %v80_v60 = vadd.f32 %v79_v54, %v78_v50  ;;  %v94_v61 = vadd.f32 %v93_v55, %v92_v51  ;;  %v134_v23 = vld [vmem:[#allocation7 + $0x138] sm:$0xff]  ;;  %v87_v31 = vadd.f32 %v86_v25, %v85_v19  ;;  %v273_v55 = vlaneseq }
  0x3f   :  { %192 = vmatprep.subr.mxu0 %v102_v26  ;;  %v133_v26 = vld [vmem:[#allocation7 + $0x130] sm:$0xff] }
  0x40   :  { %193 = vmatpush1.msra.mxu0 %v101_v29  ;;  %v165_v2 = vsel %vm163_vm1, %v94_v61, %v80_v60  ;;  %v130_v29 = vld [vmem:[#allocation7 + $0x118] sm:$0xff]  ;;  %v274_v61 = vshrl.u32 %v273_v55, 7 }
  0x41   :  { %194 = vmatprep.subr.mxu0 %v100_v30  ;;  %232 = vmatprep.mubr.f32.mxu0 %v165_v2  ;;  %v73_v30 = vadd.f32 %v72_v24, %v71_v18 }
  0x42   :  { %195 = vmatpush1.msra.mxu0 %v99_v33  ;;  %v128_v33 = vld [vmem:[#allocation7 + $0x108] sm:$0xff] }
  0x43   :  { %196 = vmatprep.subr.mxu0 %v98_v34  ;;  %v127_v34 = vld [vmem:[#allocation7 + $0x100] sm:$0xff]  ;;  %v164_v35 = vsel %vm163_vm1, %v87_v31, %v73_v30 }
  0x44   :  { %197 = vmatpush1.msra.mxu0 %v97_v37 }
  0x45   :  { %198 = vmatprep.subr.mxu0 %v96_v40 }
  0x46   :  { %199 = vmatpush1.msra.mxu0 %v95_v41 }
  0x47   :  { %200 = vmatprep.subr.mxu0 %v158_v44 }
  0x48   :  { %201 = vmatpush2.msra.mxu0 %v157_v45 }
  0x49   :  { %202 = vmatprep.subr.mxu0 %v156_v48 }
  0x4a   :  { %203 = vmatpush2.msra.mxu0 %v155_v49 }
  0x4b   :  { %204 = vmatprep.subr.mxu0 %v154_v52 }
  0x4c   :  { %205 = vmatpush2.msra.mxu0 %v153_v53  ;;  %v444_v53 = vmov 1966171168  }
  0x4d   :  { %206 = vmatprep.subr.mxu0 %v152_v58  ;;  %v271_v54 = vunpack.c.l.s4 %v444_v53 }
  0x4e   :  { %207 = vmatpush2.msra.mxu0 %v151_v59 }
  0x4f   :  { %208 = vmatprep.subr.mxu0 %v150_v62  ;;  %v272_v60 = vunpack.c.0.s8 %v271_v54 }
  0x50   :  { %209 = vmatpush2.msra.mxu0 %v149_v1 }
  0x51   :  { %210 = vmatprep.subr.mxu0 %v148_v3  ;;  %v275_v1 = vsub.s32 %v272_v60, %v274_v61 }
  0x52   :  { %211 = vmatpush2.msra.mxu0 %v147_v4  ;;  %v294_v4 = vsub.s32 0, %v274_v61 }
  0x53   :  { %212 = vmatprep.subr.mxu0 %v146_v5  ;;  %v298_v5 = vsub.s32 1, %v274_v61 }
  0x54   :  { %213 = vmatpush2.msra.mxu0 %v145_v8 }
  0x55   :  { %214 = vmatprep.subr.mxu0 %v144_v9 }
  0x56   :  { %215 = vmatpush2.msra.mxu0 %v143_v10 }
  0x57   :  { %216 = vmatprep.subr.mxu0 %v142_v11  ;;  %v265_v11 = vld [vmem:[#allocation2] sm:$0xff] }
  0x58   :  { %217 = vmatpush2.msra.mxu0 %v141_v14 }
  0x59   :  { %218 = vmatprep.subr.mxu0 %v140_v15  ;;  %v266_v15 = vld [vmem:[#allocation2 + $0x8] sm:$0xff] }
  0x5a   :  { %219 = vmatpush2.msra.mxu0 %v139_v16 }
  0x5b   :  { %220 = vmatprep.subr.mxu0 %v138_v17 }
  0x5c   :  { %221 = vmatpush2.msra.mxu0 %v137_v20 }
  0x5d   :  { %222 = vmatprep.subr.mxu0 %v136_v21 }
  0x5e   :  { %223 = vmatpush2.msra.mxu0 %v135_v22 }
  0x5f   :  { %224 = vmatprep.subr.mxu0 %v134_v23 }
  0x60   :  { %225 = vmatpush2.msra.mxu0 %v133_v26 }
  0x61   :  { %226 = vmatprep.subr.mxu0 %v132_v27 }
  0x62   :  { %227 = vmatpush2.msra.mxu0 %v131_v28 }
  0x63   :  { %228 = vmatprep.subr.mxu0 %v130_v29 }
  0x64   :  { %229 = vmatpush2.msra.mxu0 %v129_v32 }
  0x65   :  { %230 = vmatprep.subr.mxu0 %v128_v33 }
  0x66   :  { %231 = vmatpush2.msra.mxu0 %v127_v34 }
  0x67   :  { %233 = vmatmul.mubr.f32.vlgmr.msra.gmra.mxu0 %v164_v35 }
 0x127   :  { %v234_v36 = vpop.f32.mrf.mxu0 }
 0x128   :  { %v239_v37 = vand.u32 2147483647, %v234_v36 }
 0x129   :  { %v236_v38 = vpop.f32.mrf.mxu0 }
 0x12a   :  { %343 = vrsqrt.f32 %v239_v37  ;;  %v240_v39 = vand.u32 2147483647, %v236_v38  ;;  %vm243_vm2 = vcmp.eq.f32.partialorder %v239_v37, inf  ;;  %v246_v42 = vand.u32 2147483648, %v239_v37 }
 0x12b   :  { %vm245_vm3 = vcmp.eq.f32.partialorder %v239_v37, 0.0 }
 0x12c   :  { %345 = vrsqrt.f32 %v240_v39  ;;  %vm250_vm4 = vcmp.eq.f32.partialorder %v240_v39, inf  ;;  %v253_v48 = vand.u32 2147483648, %v240_v39  ;;  %vm252_vm5 = vcmp.eq.f32.partialorder %v240_v39, 0.0 }
 0x137   :  { %v344_v40 = vpop.eup %343 }
 0x138   :  { %v242_v41 = vmul.f32 %v344_v40, %v239_v37 }
 0x139   :  { %v346_v43 = vpop.eup %345 }
 0x13a   :  { %v244_v44 = vsel %vm243_vm2, %v239_v37, %v242_v41  ;;  %v249_v46 = vmul.f32 %v346_v43, %v240_v39 }
 0x13b   :  { %v247_v45 = vsel %vm245_vm3, %v246_v42, %v244_v44 }
 0x13c   :  { %v255_v47 = vadd.f32 0.3, %v247_v45  ;;  %v251_v49 = vsel %vm250_vm4, %v240_v39, %v249_v46 }
 0x13d   :  { %v254_v50 = vsel %vm252_vm5, %v253_v48, %v251_v49 }
 0x13e   :  { %347 = vrcp.f32 %v255_v47  ;;  %v256_v51 = vadd.f32 0.3, %v254_v50 }
 0x140   :  { %349 = vrcp.f32 %v256_v51 }
 0x14b   :  { %v348_v52 = vpop.eup %347 }
 0x14c   :  { %v259_v56 = vmul.f32 %v348_v52, %v255_v47 }
 0x14d   :  { %v350_v57 = vpop.eup %349 }
 0x14e   :  { %v260_v58 = vmul.f32 %v350_v57, %v256_v51  ;;  %v261_v59 = vsub.f32 2.0, %v259_v56 }
 0x150   :  { %v262_v62 = vsub.f32 2.0, %v260_v58  ;;  %v263_v63 = vmul.f32 %v348_v52, %v261_v59 }
 0x152   :  { %v264_v0 = vmul.f32 %v350_v57, %v262_v62 }
 0x154   :  { %v269_v2 = vcombine.low %v263_v63, %v264_v0 }
 0x156   :  { %v276_v3 = vrot.slane %v269_v2, %v275_v1 }
 0x158   :  { %v277_v6 = vcombine.high %v276_v3, %v276_v3  ;;  %v284_v7 = vrot.slane %v276_v3, %v275_v1 }
 0x15a   :  { %v291_v8 = vrot.slane %v277_v6, %v275_v1  ;;  %v295_v9 = vrot.slane %v284_v7, %v294_v4  ;;  %v299_v10 = vrot.slane %v284_v7, %v298_v5 }
 0x15c   :  { %v303_v12 = vrot.slane %v291_v8, %v294_v4  ;;  %v307_v13 = vrot.slane %v291_v8, %v298_v5  ;;  %v308_v14 = vcombine.low %v295_v9, %v299_v10 }
 0x15e   :  { %v309_v16 = vcombine.low %v303_v12, %v307_v13  ;;  %v312_v17 = vmul.f32 %v308_v14, %v265_v11 }
 0x160   :  { %v313_v18 = vmul.f32 %v309_v16, %v266_v15  ;;  %314 = vst [vmem:[#allocation8] sm:$0xff] %v312_v17 }
 0x162   :  { %315 = vst [vmem:[#allocation8 + $0x8] sm:$0xff] %v313_v18 }
 0x163   :  { %422 = shalt.err (!%p419_p5)
}
 0x164   :  { %327 = dma.vmem_to_hbm [thread:$0]  %s322_s2, 256, %s496_s3, [#allocation4], %s439_s17, %s439_s17, %s440_s18  }
 0x165   :  { %435 = dma.done.wait [#allocation4], 256  }
 0x166   :  { %436 = vsyncadd [#allocation4], 4294967040 }
 0x167   :  { %331 = vsyncpa [#allocation3], 1 }
 0x168   :  { %332 = vsyncpa [#allocation6], 1 }
 0x169   :  { %333 = vsyncpa [#allocation4], 1 }

</bundles_post_ra>
